<compile_context>
chip_gen: v5e
topology: v5e:2x2
jax: 0.10.0
libtpu: 0.0.40
codegen_flags: <defaults>
</compile_context>

<pallas_src>
import functools

import jax
import jax.numpy as jnp
from jax.experimental import pallas as pl
from jax.experimental.pallas import tpu as pltpu


HIDDEN_DIM = 256
NEG_SLOPE = 0.01      # F.leaky_relu default
LANE = 128            # TPU lane width
SUBLANE = 8
MAX_BATCH_TILE = 512  # cap so x/out tiles stay trivially inside VMEM on v7x too


def _round_up(x, m):
    return -(-x // m) * m


def _leaky_relu(x):
    return jnp.where(x > 0, x, NEG_SLOPE * x)


def deep_q_leaky_kernel(x_ref, w1_ref, b1_ref, w2_ref, b2_ref, w3_ref, b3_ref,
                        out_ref):
    """Fused 3-layer MLP on one (TM, in_dim) batch tile.

    Matmul operands use the weights' dtype (f32 or bf16, decided once in
    prepare_params); accumulation, bias add and leaky_relu stay in f32.
    """
    mm_dtype = w1_ref.dtype

    x = x_ref[...]
    if x.dtype != mm_dtype:   # trace-time branch; bf16 path casts x in the wrapper
        x = x.astype(mm_dtype)

    # Layer 1: linear1 + leaky_relu
    h1 = jnp.dot(x, w1_ref[...], preferred_element_type=jnp.float32)
    h1 = _leaky_relu(h1 + b1_ref[...])

    # Layer 2: linear4 + leaky_relu
    h2 = jnp.dot(h1.astype(mm_dtype), w2_ref[...],
                 preferred_element_type=jnp.float32)
    h2 = _leaky_relu(h2 + b2_ref[...])

    # Layer 3: linear_stpt (no activation); output features are lane-padded.
    out = jnp.dot(h2.astype(mm_dtype), w3_ref[...],
                  preferred_element_type=jnp.float32)
    out_ref[...] = (out + b3_ref[...]).astype(out_ref.dtype)


def prepare_params(w1, b1, w2, b2, w3, b3, *, use_bf16_matmul=True):
    """One-time weight prep, done OUTSIDE the per-call path.

    - Pads linear_stpt's output features up to a multiple of 128 so the kernel's
      stores are lane-dense unmasked vst's (padded cols: zero weight + zero bias).
    - Casts matmul-operand weights to bf16 (MXU-native path; halves resident
      weight VMEM and the one-time weight DMA). Biases stay f32.
    Returns (params_tuple, n_actions).
    """
    n_actions = w3.shape[1]
    n_pad = _round_up(n_actions, LANE)
    if n_pad != n_actions:
        w3 = jnp.pad(w3, ((0, 0), (0, n_pad - n_actions)))
        b3 = jnp.pad(b3, ((0, 0), (0, n_pad - n_actions)))

    mm_dtype = jnp.bfloat16 if use_bf16_matmul else jnp.float32
    params = (w1.astype(mm_dtype), b1.astype(jnp.float32),
              w2.astype(mm_dtype), b2.astype(jnp.float32),
              w3.astype(mm_dtype), b3.astype(jnp.float32))
    return params, n_actions


def _choose_batch_tile(batch):
    """Adaptive batch tile.

    - sublane-align (8),
    - split into >= 2 tiles once batch exceeds one tile so the "parallel" grid
      axis actually feeds both v7x TensorCores (no-op on single-TC v5e/v6e),
    - cap at MAX_BATCH_TILE: big enough to amortize per-step pipeline overhead
      and fill the MXU, small enough that double-buffered x/out tiles are <~1.5 MB.
    """
    b8 = _round_up(max(batch, 1), SUBLANE)
    tm = min(MAX_BATCH_TILE, _round_up(-(-b8 // 2), SUBLANE))
    return max(SUBLANE, min(tm, b8))


@functools.partial(jax.jit, static_argnames=("n_actions", "out_dtype"))
def deep_q_leaky_forward(x, w1, b1, w2, b2, w3, b3, *, n_actions,
                         out_dtype=jnp.float32):
    """Batch-tiled pallas_call wrapper; weights (already prepared) stay resident."""
    mm_dtype = w1.dtype
    # PyTorch does x.float(); for the bf16 MXU path cast once here instead of
    # per grid step inside the kernel (halves the streamed x DMA).
    x = x.astype(jnp.bfloat16 if mm_dtype == jnp.bfloat16 else jnp.float32)

    batch, in_dim = x.shape
    n_pad = w3.shape[1]          # already lane-padded by prepare_params

    tm = _choose_batch_tile(batch)
    padded_batch = _round_up(batch, tm)
    if padded_batch != batch:    # pad only when the tile doesn't divide the batch
        x = jnp.pad(x, ((0, padded_batch - batch), (0, 0)))
    grid = (padded_batch // tm,)

    # Weights/biases: full-array blocks with constant index_map -> DMA'd once,
    # resident in VMEM for every grid step.
    def resident(arr):
        return pl.BlockSpec(arr.shape, lambda i: (0,) * arr.ndim)

    out = pl.pallas_call(
        deep_q_leaky_kernel,
        out_shape=jax.ShapeDtypeStruct((padded_batch, n_pad), out_dtype),
        grid=grid,
        in_specs=[
            pl.BlockSpec((tm, in_dim), lambda i: (i, 0)),   # x tile (streamed)
            resident(w1), resident(b1),
            resident(w2), resident(b2),
            resident(w3), resident(b3),
        ],
        out_specs=pl.BlockSpec((tm, n_pad), lambda i: (i, 0)),
        compiler_params=pltpu.CompilerParams(
            dimension_semantics=("parallel",)),  # v7x: shard batch tiles across TCs
    )(x, w1, b1, w2, b2, w3, b3)

    if padded_batch != batch:
        out = out[:batch]
    if n_pad != n_actions:
        out = out[:, :n_actions]
    return out


def init_params(key, input_dim, n_actions, hidden_dim=HIDDEN_DIM):
    """Deterministic PyTorch-style (Kaiming-uniform-ish) init, stored as (in, out)."""
    def linear_init(k, fan_in, fan_out):
        kw, kb = jax.random.split(k)
        bound = 1.0 / jnp.sqrt(float(fan_in))
        w = jax.random.uniform(kw, (fan_in, fan_out), jnp.float32, -bound, bound)
        b = jax.random.uniform(kb, (1, fan_out), jnp.float32, -bound, bound)
        return w, b

    k1, k2, k3 = jax.random.split(key, 3)
    w1, b1 = linear_init(k1, input_dim, hidden_dim)
    w2, b2 = linear_init(k2, hidden_dim, hidden_dim)
    w3, b3 = linear_init(k3, hidden_dim, n_actions)
    return w1, b1, w2, b2, w3, b3


def _reference(x, w1, b1, w2, b2, w3, b3):
    h1 = x.astype(jnp.float32) @ w1 + b1
    h1 = jnp.where(h1 > 0, h1, NEG_SLOPE * h1)
    h2 = h1 @ w2 + b2
    h2 = jnp.where(h2 > 0, h2, NEG_SLOPE * h2)
    return h2 @ w3 + b3


if __name__ == "__main__":
    key = jax.random.PRNGKey(0)
    k_x, k_x2, k_p = jax.random.split(key, 3)

    input_dim = 16      # input_dims[0]
    n_act = 4
    raw = init_params(k_p, input_dim, n_act)

    # Strict f32 path (matches the module's all-f32 numerics).
    params_f32, n_actions = prepare_params(*raw, use_bf16_matmul=False)
    # Default perf path: bf16 MXU operands, pre-cast once here (not per call).
    params_bf16, _ = prepare_params(*raw, use_bf16_matmul=True)

    # --- Small batch: single full-extent tile path. -------------------------
    batch = 8
    x = jax.random.normal(k_x, (batch, input_dim), jnp.float32)
    ref = _reference(x, *raw)
    out = jax.block_until_ready(
        deep_q_leaky_forward(x, *params_f32, n_actions=n_actions))
    assert out.shape == (batch, n_act) and out.dtype == jnp.float32
    assert jnp.allclose(out, ref, atol=1e-4, rtol=1e-4)

    # --- Larger batch: adaptive tile, >=2 grid steps, ragged batch padding. --
    batch2 = 260
    x2 = jax.random.normal(k_x2, (batch2, input_dim), jnp.float32)
    ref2 = _reference(x2, *raw)
    out2 = jax.block_until_ready(
        deep_q_leaky_forward(x2, *params_f32, n_actions=n_actions))
    assert out2.shape == (batch2, n_act)
    assert jnp.allclose(out2, ref2, atol=1e-4, rtol=1e-4)

    # --- bf16-operand matmul path (default perf config; looser tolerance). --
    out2b = jax.block_until_ready(
        deep_q_leaky_forward(x2, *params_bf16, n_actions=n_actions))
    assert jnp.allclose(out2b, ref2, atol=5e-2, rtol=5e-2)

    # --- bf16 output option (halves the padded writeback for bf16 consumers).
    out2c = jax.block_until_ready(
        deep_q_leaky_forward(x2, *params_bf16, n_actions=n_actions,
                             out_dtype=jnp.bfloat16))
    assert out2c.dtype == jnp.bfloat16 and out2c.shape == (batch2, n_act)
    assert jnp.allclose(out2c.astype(jnp.float32), ref2, atol=1e-1, rtol=1e-1)

    print("KERNEL_OK")
</pallas_src>

<mosaic_0001>
module attributes {stable_mosaic.version = 11 : i64} {
  func.func @deep_q_leaky_kernel(%arg0: i32, %arg1: memref<8x16xf32, #tpu.memory_space<vmem>>, %arg2: memref<16x256xf32, #tpu.memory_space<vmem>>, %arg3: memref<1x256xf32, #tpu.memory_space<vmem>>, %arg4: memref<256x256xf32, #tpu.memory_space<vmem>>, %arg5: memref<1x256xf32, #tpu.memory_space<vmem>>, %arg6: memref<256x128xf32, #tpu.memory_space<vmem>>, %arg7: memref<1x128xf32, #tpu.memory_space<vmem>>, %arg8: memref<8x128xf32, #tpu.memory_space<vmem>>) attributes {dimension_semantics = [#tpu.dimension_semantics<parallel>], iteration_bounds = array<i64: 1>, scalar_prefetch = 0 : i64, scratch_operands = 0 : i64, tpu.core_type = #tpu.core_type<tc>, window_params = [{transform_indices = @transform_0, window_bounds = array<i64: 8, 16>}, {pipeline_mode = #tpu.pipeline_mode<synchronous>, transform_indices = @transform_1, window_bounds = array<i64: 16, 256>}, {pipeline_mode = #tpu.pipeline_mode<synchronous>, transform_indices = @transform_2, window_bounds = array<i64: 1, 256>}, {pipeline_mode = #tpu.pipeline_mode<synchronous>, transform_indices = @transform_3, window_bounds = array<i64: 256, 256>}, {pipeline_mode = #tpu.pipeline_mode<synchronous>, transform_indices = @transform_4, window_bounds = array<i64: 1, 256>}, {pipeline_mode = #tpu.pipeline_mode<synchronous>, transform_indices = @transform_5, window_bounds = array<i64: 256, 128>}, {pipeline_mode = #tpu.pipeline_mode<synchronous>, transform_indices = @transform_6, window_bounds = array<i64: 1, 128>}, {transform_indices = @transform_7, window_bounds = array<i64: 8, 128>}]} {
    %c0 = arith.constant 0 : index
    %c0_0 = arith.constant 0 : index
    %0 = vector.load %arg1[%c0, %c0_0] : memref<8x16xf32, #tpu.memory_space<vmem>>, vector<8x16xf32>
    %c0_1 = arith.constant 0 : index
    %c0_2 = arith.constant 0 : index
    %1 = vector.load %arg2[%c0_1, %c0_2] : memref<16x256xf32, #tpu.memory_space<vmem>>, vector<16x256xf32>
    %cst = arith.constant dense<0.000000e+00> : vector<8x256xf32>
    %2 = tpu.matmul %0, %1, %cst {dimension_numbers = #tpu.dot_dimension_numbers<[1], [0], [0], [1], [0, 0, 1, 1], [], []>} : vector<8x16xf32>, vector<16x256xf32>, vector<8x256xf32> -> vector<8x256xf32>
    %c0_3 = arith.constant 0 : index
    %c0_4 = arith.constant 0 : index
    %3 = vector.load %arg3[%c0_3, %c0_4] : memref<1x256xf32, #tpu.memory_space<vmem>>, vector<1x256xf32>
    %4 = vector.broadcast %3 : vector<1x256xf32> to vector<8x256xf32>
    %5 = arith.addf %2, %4 : vector<8x256xf32>
    %cst_5 = arith.constant 0.000000e+00 : f32
    %6 = vector.broadcast %cst_5 : f32 to vector<8x256xf32>
    %7 = arith.cmpf ogt, %5, %6 : vector<8x256xf32>
    %cst_6 = arith.constant 0.00999999977 : f32
    %8 = vector.broadcast %cst_6 : f32 to vector<8x256xf32>
    %9 = arith.mulf %8, %5 : vector<8x256xf32>
    %10 = arith.select %7, %5, %9 : vector<8x256xi1>, vector<8x256xf32>
    %c0_7 = arith.constant 0 : index
    %c0_8 = arith.constant 0 : index
    %11 = vector.load %arg4[%c0_7, %c0_8] : memref<256x256xf32, #tpu.memory_space<vmem>>, vector<256x256xf32>
    %cst_9 = arith.constant dense<0.000000e+00> : vector<8x256xf32>
    %12 = tpu.matmul %10, %11, %cst_9 {dimension_numbers = #tpu.dot_dimension_numbers<[1], [0], [0], [1], [0, 0, 1, 1], [], []>} : vector<8x256xf32>, vector<256x256xf32>, vector<8x256xf32> -> vector<8x256xf32>
    %c0_10 = arith.constant 0 : index
    %c0_11 = arith.constant 0 : index
    %13 = vector.load %arg5[%c0_10, %c0_11] : memref<1x256xf32, #tpu.memory_space<vmem>>, vector<1x256xf32>
    %14 = vector.broadcast %13 : vector<1x256xf32> to vector<8x256xf32>
    %15 = arith.addf %12, %14 : vector<8x256xf32>
    %cst_12 = arith.constant 0.000000e+00 : f32
    %16 = vector.broadcast %cst_12 : f32 to vector<8x256xf32>
    %17 = arith.cmpf ogt, %15, %16 : vector<8x256xf32>
    %cst_13 = arith.constant 0.00999999977 : f32
    %18 = vector.broadcast %cst_13 : f32 to vector<8x256xf32>
    %19 = arith.mulf %18, %15 : vector<8x256xf32>
    %20 = arith.select %17, %15, %19 : vector<8x256xi1>, vector<8x256xf32>
    %c0_14 = arith.constant 0 : index
    %c0_15 = arith.constant 0 : index
    %21 = vector.load %arg6[%c0_14, %c0_15] : memref<256x128xf32, #tpu.memory_space<vmem>>, vector<256x128xf32>
    %cst_16 = arith.constant dense<0.000000e+00> : vector<8x128xf32>
    %22 = tpu.matmul %20, %21, %cst_16 {dimension_numbers = #tpu.dot_dimension_numbers<[1], [0], [0], [1], [0, 0, 1, 1], [], []>} : vector<8x256xf32>, vector<256x128xf32>, vector<8x128xf32> -> vector<8x128xf32>
    %c0_17 = arith.constant 0 : index
    %c0_18 = arith.constant 0 : index
    %23 = vector.load %arg7[%c0_17, %c0_18] : memref<1x128xf32, #tpu.memory_space<vmem>>, vector<1x128xf32>
    %24 = vector.broadcast %23 : vector<1x128xf32> to vector<8x128xf32>
    %25 = arith.addf %22, %24 : vector<8x128xf32>
    %c0_19 = arith.constant 0 : index
    %c0_20 = arith.constant 0 : index
    %26 = vector.load %arg8[%c0_19, %c0_20] : memref<8x128xf32, #tpu.memory_space<vmem>>, vector<8x128xf32>
    tpu.vector_store %arg8[%c0_19, %c0_20], %25 {strides = array<i32>} : memref<8x128xf32, #tpu.memory_space<vmem>>, vector<8x128xf32>,
    return
  }
  func.func @transform_0(%arg0: i32) -> (i32, i32) {
    %c0_i32 = arith.constant 0 : i32
    %c0_i32_0 = arith.constant 0 : i32
    return %arg0, %c0_i32 : i32, i32
  }
  func.func @transform_1(%arg0: i32) -> (i32, i32) {
    %c0_i32 = arith.constant 0 : i32
    %c0_i32_0 = arith.constant 0 : i32
    %c0_i32_1 = arith.constant 0 : i32
    return %c0_i32, %c0_i32_0 : i32, i32
  }
  func.func @transform_2(%arg0: i32) -> (i32, i32) {
    %c0_i32 = arith.constant 0 : i32
    %c0_i32_0 = arith.constant 0 : i32
    %c0_i32_1 = arith.constant 0 : i32
    return %c0_i32, %c0_i32_0 : i32, i32
  }
  func.func @transform_3(%arg0: i32) -> (i32, i32) {
    %c0_i32 = arith.constant 0 : i32
    %c0_i32_0 = arith.constant 0 : i32
    %c0_i32_1 = arith.constant 0 : i32
    return %c0_i32, %c0_i32_0 : i32, i32
  }
  func.func @transform_4(%arg0: i32) -> (i32, i32) {
    %c0_i32 = arith.constant 0 : i32
    %c0_i32_0 = arith.constant 0 : i32
    %c0_i32_1 = arith.constant 0 : i32
    return %c0_i32, %c0_i32_0 : i32, i32
  }
  func.func @transform_5(%arg0: i32) -> (i32, i32) {
    %c0_i32 = arith.constant 0 : i32
    %c0_i32_0 = arith.constant 0 : i32
    %c0_i32_1 = arith.constant 0 : i32
    return %c0_i32, %c0_i32_0 : i32, i32
  }
  func.func @transform_6(%arg0: i32) -> (i32, i32) {
    %c0_i32 = arith.constant 0 : i32
    %c0_i32_0 = arith.constant 0 : i32
    %c0_i32_1 = arith.constant 0 : i32
    return %c0_i32, %c0_i32_0 : i32, i32
  }
  func.func @transform_7(%arg0: i32) -> (i32, i32) {
    %c0_i32 = arith.constant 0 : i32
    %c0_i32_0 = arith.constant 0 : i32
    return %arg0, %c0_i32 : i32, i32
  }
}

</mosaic_0001>

<bundles_post_ra>
// kernel: deep_q_leaky_forward.1
= control target key start
LH: loop header
LB: loop body
LE: loop exit
PB: predicated region body
PF: predicated region fallthrough
CT: control target
= control target key end

     0   :  { %12 = vsyncpa [#allocation3], 0  ;;  %s612_s0 = inlined_call_operand.hbm [shape: f32[8,16], index: 0, kind: input, shape index: {}]   ;;  %s613_s1 = inlined_call_operand.hbm [shape: f32[16,256], index: 1, kind: input, shape index: {}]   ;;  %s614_s2 = inlined_call_operand.hbm [shape: f32[1,256], index: 2, kind: input, shape index: {}]   ;;  %s615_s3 = inlined_call_operand.hbm [shape: f32[256,256], index: 3, kind: input, shape index: {}]   ;;  %s616_s4 = inlined_call_operand.vmem [shape: f32[1,256], index: 4, kind: input, shape index: {}]   ;;  %s617_s5 = inlined_call_operand.hbm [shape: f32[256,128], index: 5, kind: input, shape index: {}]   ;;  %s618_s6 = inlined_call_operand.vmem [shape: f32[1,128], index: 6, kind: input, shape index: {}]   ;;  %s619_s7 = inlined_call_operand.vmem [shape: f32[8,128], index: 7, kind: output, shape index: {}]  }
   0x1   :  { %13 = vsyncpa [#allocation5], 0  ;;  %s30_s26 = sshll.u32 %s613_s1, 4  ;;  %s31_s26 = int_to_ptr.hbm [resolvable:$true] %s30_s26 }
   0x2   :  { %14 = vsyncpa [#allocation8], 0  ;;  %s539_s27 = smov [#allocation4]   ;;  %s54_s8 = sshll.u32 %s615_s3, 4  ;;  %s55_s8 = int_to_ptr.hbm [resolvable:$true] %s54_s8 }
   0x3   :  { %s32_s28 = sshll.u32 %s539_s27, 4  ;;  %s540_s9 = smov 256   ;;  %s33_s28 = int_to_ptr.vmem [resolvable:$true] %s32_s28 }
   0x4   :  { %s541_s10 = smov 16   ;;  %s542_s11 = smov [#allocation7]  }
   0x5   :  { %38 = dma.hbm_to_vmem [thread:$0]  %s31_s26, 512, %s33_s28, [#allocation5], %s540_s9, %s540_s9, %s541_s10  }
   0x6   :  { %s56_s12 = sshll.u32 %s542_s11, 4  ;;  %s20_s15 = sshll.u32 %s612_s0, 4  ;;  %s57_s12 = int_to_ptr.vmem [resolvable:$true] %s56_s12  ;;  %s21_s15 = int_to_ptr.hbm [resolvable:$true] %s20_s15 }
   0x7   :  { %62 = dma.hbm_to_vmem [thread:$0]  %s55_s8, 8192, %s57_s12, [#allocation8], %s540_s9, %s540_s9, %s541_s10  }
   0x8   :  { %s44_s17 = sshll.u32 %s614_s2, 4  ;;  %s543_s18 = smov [#allocation2]   ;;  %s45_s17 = int_to_ptr.hbm [resolvable:$true] %s44_s17 }
   0x9   :  { %s22_s19 = sshll.u32 %s543_s18, 4  ;;  %s544_s3 = smov [#allocation6]   ;;  %s23_s19 = int_to_ptr.vmem [resolvable:$true] %s22_s19 }
   0xa   :  { %25 = dma.hbm_to_vmem [thread:$0]  %s21_s15, 128, %s23_s19, [#allocation3]  }
   0xb   :  { %s46_s20 = sshll.u32 %s544_s3, 4  ;;  %s69_s23 = sshll.u32 %s617_s5, 4  ;;  %s47_s20 = int_to_ptr.vmem [resolvable:$true] %s46_s20  ;;  %s70_s23 = int_to_ptr.hbm [resolvable:$true] %s69_s23 }
   0xc   :  { %49 = dma.hbm_to_vmem [thread:$0]  %s45_s17, 32, %s47_s20, [#allocation5]  }
   0xd   :  { %s545_s0 = smov [#allocation9]   ;;  %s546_s25 = smov 128  }
   0xe   :  { %s71_s24 = sshll.u32 %s545_s0, 4  ;;  %s547_s26 = smov 8   ;;  %s72_s24 = int_to_ptr.vmem [resolvable:$true] %s71_s24 }
   0xf   :  { %77 = dma.hbm_to_vmem [thread:$0]  %s70_s23, 4096, %s72_s24, [#allocation8], %s546_s25, %s546_s25, %s547_s26  }
  0x10   :  { %533 = dma.done.wait [#allocation3], 128  }
  0x11   :  { %534 = vsyncadd [#allocation3], 4294967168 }
  0x12   :  { %535 = dma.done.wait [#allocation5], 544  }
  0x13   :  { %536 = vsyncadd [#allocation5], 4294966752 }
  0x14   :  { %537 = dma.done.wait [#allocation8], 12288  }
  0x15   :  { %538 = vsyncadd [#allocation8], 4294955008  ;;  %v103_v0 = vld [vmem:[#allocation4 + $0x10] sm:$0xff]  ;;  %v104_v1 = vld [vmem:[#allocation4 + $0x18] sm:$0xff]  ;;  %vm111_vm0 = vcmask 130048  }
  0x16   :  { %v101_v2 = vld [vmem:[#allocation4] sm:$0xff]  ;;  %129 = vmatpush.msra.mxu0 %v103_v0  ;;  %149 = vmatpush.msra.mxu1 %v104_v1  ;;  %v102_v3 = vld [vmem:[#allocation4 + $0x8] sm:$0xff]  ;;  %v100_v4 = vld [vmem:[#allocation2] sm:$0xff] }
  0x17   :  { %v191_v5 = vld [vmem:[#allocation7 + $0xf0] sm:$0xff]  ;;  %v192_v7 = vld [vmem:[#allocation7 + $0xf8] sm:$0xff]  ;;  %v189_v9 = vld [vmem:[#allocation7 + $0xe0] sm:$0xff] }
  0x18   :  { %231 = vmatpush.msra.mxu2 %v191_v5  ;;  %v223_v6 = vld [vmem:[#allocation7 + $0x1f0] sm:$0xff]  ;;  %130 = vmatpush.msra.mxu0 %v101_v2  ;;  %v224_v8 = vld [vmem:[#allocation7 + $0x1f8] sm:$0xff]  ;;  %v221_v10 = vld [vmem:[#allocation7 + $0x1e0] sm:$0xff] }
  0x19   :  { %150 = vmatpush.msra.mxu1 %v102_v3  ;;  %401 = vmatmul.msk.f32.vlgmr.msra.gmra.mxu0 %vm111_vm0, %v100_v4  ;;  %v190_v11 = vld [vmem:[#allocation7 + $0xe8] sm:$0xff]  ;;  %v187_v13 = vld [vmem:[#allocation7 + $0xd0] sm:$0xff]  ;;  %v188_v15 = vld [vmem:[#allocation7 + $0xd8] sm:$0xff] }
  0x1a   :  { %402 = vmatmul.msk.f32.vlgmr.msra.gmra.mxu1 %vm111_vm0, %v100_v4  ;;  %251 = vmatpush.msra.mxu3 %v223_v6  ;;  %v222_v12 = vld [vmem:[#allocation7 + $0x1e8] sm:$0xff]  ;;  %v219_v14 = vld [vmem:[#allocation7 + $0x1d0] sm:$0xff]  ;;  %v220_v16 = vld [vmem:[#allocation7 + $0x1d8] sm:$0xff] }
  0x1b   :  { %271 = vmatpush.msrb.mxu0 %v192_v7  ;;  %291 = vmatpush.msrb.mxu1 %v224_v8  ;;  %v185_v17 = vld [vmem:[#allocation7 + $0xc0] sm:$0xff]  ;;  %v186_v19 = vld [vmem:[#allocation7 + $0xc8] sm:$0xff]  ;;  %v183_v21 = vld [vmem:[#allocation7 + $0xb0] sm:$0xff] }
  0x1c   :  { %232 = vmatpush.msra.mxu2 %v189_v9  ;;  %252 = vmatpush.msra.mxu3 %v221_v10  ;;  %v217_v18 = vld [vmem:[#allocation7 + $0x1c0] sm:$0xff]  ;;  %v218_v20 = vld [vmem:[#allocation7 + $0x1c8] sm:$0xff]  ;;  %v215_v22 = vld [vmem:[#allocation7 + $0x1b0] sm:$0xff] }
  0x1d   :  { %272 = vmatpush.msrb.mxu0 %v190_v11  ;;  %292 = vmatpush.msrb.mxu1 %v222_v12  ;;  %v184_v23 = vld [vmem:[#allocation7 + $0xb8] sm:$0xff]  ;;  %v181_v25 = vld [vmem:[#allocation7 + $0xa0] sm:$0xff]  ;;  %v182_v27 = vld [vmem:[#allocation7 + $0xa8] sm:$0xff] }
  0x1e   :  { %233 = vmatpush.msra.mxu2 %v187_v13  ;;  %253 = vmatpush.msra.mxu3 %v219_v14  ;;  %v216_v24 = vld [vmem:[#allocation7 + $0x1b8] sm:$0xff]  ;;  %v213_v26 = vld [vmem:[#allocation7 + $0x1a0] sm:$0xff]  ;;  %v214_v28 = vld [vmem:[#allocation7 + $0x1a8] sm:$0xff] }
  0x1f   :  { %273 = vmatpush.msrb.mxu0 %v188_v15  ;;  %293 = vmatpush.msrb.mxu1 %v220_v16  ;;  %v179_v29 = vld [vmem:[#allocation7 + $0x90] sm:$0xff]  ;;  %v180_v31 = vld [vmem:[#allocation7 + $0x98] sm:$0xff]  ;;  %v177_v33 = vld [vmem:[#allocation7 + $0x80] sm:$0xff] }
  0x20   :  { %234 = vmatpush.msra.mxu2 %v185_v17  ;;  %254 = vmatpush.msra.mxu3 %v217_v18  ;;  %v211_v30 = vld [vmem:[#allocation7 + $0x190] sm:$0xff]  ;;  %v212_v32 = vld [vmem:[#allocation7 + $0x198] sm:$0xff]  ;;  %v209_v34 = vld [vmem:[#allocation7 + $0x180] sm:$0xff] }
  0x21   :  { %274 = vmatpush.msrb.mxu0 %v186_v19  ;;  %294 = vmatpush.msrb.mxu1 %v218_v20  ;;  %v178_v35 = vld [vmem:[#allocation7 + $0x88] sm:$0xff]  ;;  %v175_v37 = vld [vmem:[#allocation7 + $0x70] sm:$0xff]  ;;  %v176_v39 = vld [vmem:[#allocation7 + $0x78] sm:$0xff] }
  0x22   :  { %235 = vmatpush.msra.mxu2 %v183_v21  ;;  %255 = vmatpush.msra.mxu3 %v215_v22  ;;  %v210_v36 = vld [vmem:[#allocation7 + $0x188] sm:$0xff]  ;;  %v207_v38 = vld [vmem:[#allocation7 + $0x170] sm:$0xff]  ;;  %v208_v40 = vld [vmem:[#allocation7 + $0x178] sm:$0xff] }
  0x23   :  { %275 = vmatpush.msrb.mxu0 %v184_v23  ;;  %295 = vmatpush.msrb.mxu1 %v216_v24  ;;  %v173_v41 = vld [vmem:[#allocation7 + $0x60] sm:$0xff]  ;;  %v174_v43 = vld [vmem:[#allocation7 + $0x68] sm:$0xff]  ;;  %v171_v45 = vld [vmem:[#allocation7 + $0x50] sm:$0xff] }
  0x24   :  { %236 = vmatpush.msra.mxu2 %v181_v25  ;;  %256 = vmatpush.msra.mxu3 %v213_v26  ;;  %v205_v42 = vld [vmem:[#allocation7 + $0x160] sm:$0xff]  ;;  %v206_v44 = vld [vmem:[#allocation7 + $0x168] sm:$0xff]  ;;  %v203_v46 = vld [vmem:[#allocation7 + $0x150] sm:$0xff] }
  0x25   :  { %276 = vmatpush.msrb.mxu0 %v182_v27  ;;  %296 = vmatpush.msrb.mxu1 %v214_v28  ;;  %v172_v47 = vld [vmem:[#allocation7 + $0x58] sm:$0xff]  ;;  %v169_v49 = vld [vmem:[#allocation7 + $0x40] sm:$0xff]  ;;  %v170_v51 = vld [vmem:[#allocation7 + $0x48] sm:$0xff] }
  0x26   :  { %237 = vmatpush.msra.mxu2 %v179_v29  ;;  %257 = vmatpush.msra.mxu3 %v211_v30  ;;  %v204_v48 = vld [vmem:[#allocation7 + $0x158] sm:$0xff]  ;;  %v201_v50 = vld [vmem:[#allocation7 + $0x140] sm:$0xff]  ;;  %v202_v52 = vld [vmem:[#allocation7 + $0x148] sm:$0xff] }
  0x27   :  { %277 = vmatpush.msrb.mxu0 %v180_v31  ;;  %297 = vmatpush.msrb.mxu1 %v212_v32  ;;  %v167_v53 = vld [vmem:[#allocation7 + $0x30] sm:$0xff]  ;;  %v168_v55 = vld [vmem:[#allocation7 + $0x38] sm:$0xff]  ;;  %v165_v57 = vld [vmem:[#allocation7 + $0x20] sm:$0xff] }
  0x28   :  { %238 = vmatpush.msra.mxu2 %v177_v33  ;;  %258 = vmatpush.msra.mxu3 %v209_v34  ;;  %v199_v54 = vld [vmem:[#allocation7 + $0x130] sm:$0xff]  ;;  %v200_v56 = vld [vmem:[#allocation7 + $0x138] sm:$0xff]  ;;  %v197_v58 = vld [vmem:[#allocation7 + $0x120] sm:$0xff] }
  0x29   :  { %278 = vmatpush.msrb.mxu0 %v178_v35  ;;  %298 = vmatpush.msrb.mxu1 %v210_v36  ;;  %v166_v59 = vld [vmem:[#allocation7 + $0x28] sm:$0xff]  ;;  %v163_v61 = vld [vmem:[#allocation7 + $0x10] sm:$0xff]  ;;  %v164_v63 = vld [vmem:[#allocation7 + $0x18] sm:$0xff] }
  0x2a   :  { %239 = vmatpush.msra.mxu2 %v175_v37  ;;  %259 = vmatpush.msra.mxu3 %v207_v38  ;;  %v198_v60 = vld [vmem:[#allocation7 + $0x128] sm:$0xff]  ;;  %v195_v62 = vld [vmem:[#allocation7 + $0x110] sm:$0xff]  ;;  %v196_v0 = vld [vmem:[#allocation7 + $0x118] sm:$0xff] }
  0x2b   :  { %279 = vmatpush.msrb.mxu0 %v176_v39  ;;  %299 = vmatpush.msrb.mxu1 %v208_v40  ;;  %v161_v1 = vld [vmem:[#allocation7] sm:$0xff]  ;;  %v162_v3 = vld [vmem:[#allocation7 + $0x8] sm:$0xff]  ;;  %v348_v5 = vld [vmem:[#allocation9 + $0xf8] sm:$0xff] }
  0x2c   :  { %240 = vmatpush.msra.mxu2 %v173_v41  ;;  %260 = vmatpush.msra.mxu3 %v205_v42  ;;  %v193_v2 = vld [vmem:[#allocation7 + $0x100] sm:$0xff]  ;;  %v194_v4 = vld [vmem:[#allocation7 + $0x108] sm:$0xff]  ;;  %v347_v6 = vld [vmem:[#allocation9 + $0xf0] sm:$0xff] }
  0x2d   :  { %280 = vmatpush.msrb.mxu0 %v174_v43  ;;  %300 = vmatpush.msrb.mxu1 %v206_v44  ;;  %v332_v7 = vld [vmem:[#allocation9 + $0x78] sm:$0xff]  ;;  %v331_v8 = vld [vmem:[#allocation9 + $0x70] sm:$0xff]  ;;  %v346_v9 = vld [vmem:[#allocation9 + $0xe8] sm:$0xff] }
  0x2e   :  { %241 = vmatpush.msra.mxu2 %v171_v45  ;;  %261 = vmatpush.msra.mxu3 %v203_v46  ;;  %v330_v10 = vld [vmem:[#allocation9 + $0x68] sm:$0xff]  ;;  %v345_v11 = vld [vmem:[#allocation9 + $0xe0] sm:$0xff]  ;;  %v344_v13 = vld [vmem:[#allocation9 + $0xd8] sm:$0xff] }
  0x2f   :  { %281 = vmatpush.msrb.mxu0 %v172_v47  ;;  %301 = vmatpush.msrb.mxu1 %v204_v48  ;;  %v329_v12 = vld [vmem:[#allocation9 + $0x60] sm:$0xff]  ;;  %v328_v14 = vld [vmem:[#allocation9 + $0x58] sm:$0xff]  ;;  %v343_v15 = vld [vmem:[#allocation9 + $0xd0] sm:$0xff] }
  0x30   :  { %242 = vmatpush.msra.mxu2 %v169_v49  ;;  %262 = vmatpush.msra.mxu3 %v201_v50  ;;  %v327_v16 = vld [vmem:[#allocation9 + $0x50] sm:$0xff]  ;;  %v342_v17 = vld [vmem:[#allocation9 + $0xc8] sm:$0xff]  ;;  %v341_v19 = vld [vmem:[#allocation9 + $0xc0] sm:$0xff] }
  0x31   :  { %282 = vmatpush.msrb.mxu0 %v170_v51  ;;  %302 = vmatpush.msrb.mxu1 %v202_v52  ;;  %v326_v18 = vld [vmem:[#allocation9 + $0x48] sm:$0xff]  ;;  %v325_v20 = vld [vmem:[#allocation9 + $0x40] sm:$0xff]  ;;  %v340_v21 = vld [vmem:[#allocation9 + $0xb8] sm:$0xff] }
  0x32   :  { %243 = vmatpush.msra.mxu2 %v167_v53  ;;  %263 = vmatpush.msra.mxu3 %v199_v54  ;;  %v324_v22 = vld [vmem:[#allocation9 + $0x38] sm:$0xff]  ;;  %v339_v23 = vld [vmem:[#allocation9 + $0xb0] sm:$0xff]  ;;  %v338_v24 = vld [vmem:[#allocation9 + $0xa8] sm:$0xff] }
  0x33   :  { %283 = vmatpush.msrb.mxu0 %v168_v55  ;;  %303 = vmatpush.msrb.mxu1 %v200_v56  ;;  %v105_v25 = vld [vmem:[#allocation6] sm:$0x3]  ;;  %v337_v26 = vld [vmem:[#allocation9 + $0xa0] sm:$0xff]  ;;  %v323_v37 = vld [vmem:[#allocation9 + $0x30] sm:$0xff] }
  0x34   :  { %244 = vmatpush.msra.mxu2 %v165_v57  ;;  %264 = vmatpush.msra.mxu3 %v197_v58  ;;  %v107_v27 = vperm.slane %v105_v25, 0  ;;  %v108_v28 = vperm.slane %v105_v25, 1  ;;  %v336_v38 = vld [vmem:[#allocation9 + $0x98] sm:$0xff]  ;;  %v322_v39 = vld [vmem:[#allocation9 + $0x28] sm:$0xff]  ;;  %v335_v40 = vld [vmem:[#allocation9 + $0x90] sm:$0xff] }
  0x35   :  { %284 = vmatpush.msrb.mxu0 %v166_v59  ;;  %304 = vmatpush.msrb.mxu1 %v198_v60  ;;  %v321_v41 = vld [vmem:[#allocation9 + $0x20] sm:$0xff]  ;;  %v334_v42 = vld [vmem:[#allocation9 + $0x88] sm:$0xff]  ;;  %v320_v43 = vld [vmem:[#allocation9 + $0x18] sm:$0xff] }
  0x36   :  { %245 = vmatpush.msra.mxu2 %v163_v61  ;;  %265 = vmatpush.msra.mxu3 %v195_v62  ;;  %v333_v44 = vld [vmem:[#allocation9 + $0x80] sm:$0xff]  ;;  %v319_v45 = vld [vmem:[#allocation9 + $0x10] sm:$0xff]  ;;  %v318_v46 = vld [vmem:[#allocation9 + $0x8] sm:$0xff] }
  0x37   :  { %285 = vmatpush.msrb.mxu0 %v164_v63  ;;  %305 = vmatpush.msrb.mxu1 %v196_v0  ;;  %v317_v47 = vld [vmem:[#allocation9] sm:$0xff]  ;;  %v225_v48 = vld [vmem:[%s616_s4] sm:$0x3] }
  0x38   :  { %246 = vmatpush.msra.mxu2 %v161_v1  ;;  %266 = vmatpush.msra.mxu3 %v193_v2  ;;  %v228_v49 = vperm.slane %v225_v48, 1  ;;  %v227_v53 = vperm.slane %v225_v48, 0  ;;  %v412_v63 = vld [vmem:[%s618_s6] ss:$0 sm:$0xff] }
  0x39   :  { %286 = vmatpush.msrb.mxu0 %v162_v3  ;;  %306 = vmatpush.msrb.mxu1 %v194_v4 }
  0x3a   :  { %373 = vmatpush.msrb.mxu3 %v348_v5  ;;  %353 = vmatpush.msrb.mxu2 %v332_v7 }
  0x3c   :  { %374 = vmatpush.msrb.mxu3 %v347_v6  ;;  %354 = vmatpush.msrb.mxu2 %v331_v8 }
  0x3e   :  { %375 = vmatpush.msrb.mxu3 %v346_v9  ;;  %355 = vmatpush.msrb.mxu2 %v330_v10 }
  0x40   :  { %376 = vmatpush.msrb.mxu3 %v345_v11  ;;  %356 = vmatpush.msrb.mxu2 %v329_v12 }
  0x42   :  { %377 = vmatpush.msrb.mxu3 %v344_v13  ;;  %357 = vmatpush.msrb.mxu2 %v328_v14 }
  0x44   :  { %378 = vmatpush.msrb.mxu3 %v343_v15  ;;  %358 = vmatpush.msrb.mxu2 %v327_v16 }
  0x46   :  { %379 = vmatpush.msrb.mxu3 %v342_v17  ;;  %359 = vmatpush.msrb.mxu2 %v326_v18 }
  0x48   :  { %380 = vmatpush.msrb.mxu3 %v341_v19  ;;  %360 = vmatpush.msrb.mxu2 %v325_v20 }
  0x4a   :  { %381 = vmatpush.msrb.mxu3 %v340_v21  ;;  %361 = vmatpush.msrb.mxu2 %v324_v22 }
  0x4c   :  { %382 = vmatpush.msrb.mxu3 %v339_v23  ;;  %362 = vmatpush.msrb.mxu2 %v323_v37 }
  0x4e   :  { %383 = vmatpush.msrb.mxu3 %v338_v24  ;;  %363 = vmatpush.msrb.mxu2 %v322_v39 }
  0x50   :  { %384 = vmatpush.msrb.mxu3 %v337_v26  ;;  %364 = vmatpush.msrb.mxu2 %v321_v41 }
  0x52   :  { %385 = vmatpush.msrb.mxu3 %v336_v38  ;;  %365 = vmatpush.msrb.mxu2 %v320_v43 }
  0x54   :  { %386 = vmatpush.msrb.mxu3 %v335_v40  ;;  %366 = vmatpush.msrb.mxu2 %v319_v45 }
  0x56   :  { %387 = vmatpush.msrb.mxu3 %v334_v42  ;;  %367 = vmatpush.msrb.mxu2 %v318_v46 }
  0x58   :  { %388 = vmatpush.msrb.mxu3 %v333_v44  ;;  %368 = vmatpush.msrb.mxu2 %v317_v47 }
  0x96   :  { %v132_v29 = vpop.f32.mrf.mxu0 }
  0x97   :  { %v152_v30 = vpop.f32.mrf.mxu1  ;;  %v133_v31 = vadd.f32 %v132_v29, %v107_v27 }
  0x98   :  { %v153_v32 = vadd.f32 %v152_v30, %v108_v28 }
  0x99   :  { %vm155_vm1 = vcmp.gt.f32.partialorder %v133_v31, 0.0  ;;  %v157_v33 = vmul.f32 0.01, %v133_v31 }
  0x9a   :  { %vm156_vm2 = vcmp.gt.f32.partialorder %v153_v32, 0.0  ;;  %v158_v34 = vmul.f32 0.01, %v153_v32 }
  0x9b   :  { %v159_v35 = vsel %vm155_vm1, %v133_v31, %v157_v33 }
  0x9c   :  { %v160_v36 = vsel %vm156_vm2, %v153_v32, %v158_v34  ;;  %247 = vmatmul.f32.vlgmr.msra.gmra.mxu2 %v159_v35  ;;  %287 = vmatmul.f32.vlgmr.msrb.gmra.mxu0 %v159_v35 }
  0x9d   :  { %267 = vmatmul.f32.vlgmr.msra.gmra.mxu3 %v160_v36  ;;  %307 = vmatmul.f32.vlgmr.msrb.gmra.mxu1 %v160_v36 }
 0x119   :  { %v288_v50 = vpop.f32.mrf.mxu0 }
 0x11a   :  { %v289_v51 = vadd.f32 %v288_v50, %v228_v49  ;;  %v308_v52 = vpop.f32.mrf.mxu1 }
 0x11c   :  { %v309_v54 = vadd.f32 %v308_v52, %v289_v51 }
 0x11e   :  { %v314_v55 = vmul.f32 0.01, %v309_v54  ;;  %vm312_vm3 = vcmp.gt.f32.partialorder %v309_v54, 0.0 }
 0x11f   :  { %v248_v56 = vpop.f32.mrf.mxu2 }
 0x120   :  { %v249_v57 = vadd.f32 %v248_v56, %v227_v53  ;;  %v268_v58 = vpop.f32.mrf.mxu3  ;;  %v316_v59 = vsel %vm312_vm3, %v309_v54, %v314_v55 }
 0x121   :  { %389 = vmatmul.f32.vlgmr.msrb.gmra.mxu3 %v316_v59 }
 0x122   :  { %v269_v60 = vadd.f32 %v268_v58, %v249_v57 }
 0x124   :  { %v313_v61 = vmul.f32 0.01, %v269_v60  ;;  %vm311_vm4 = vcmp.gt.f32.partialorder %v269_v60, 0.0 }
 0x126   :  { %v315_v62 = vsel %vm311_vm4, %v269_v60, %v313_v61 }
 0x127   :  { %369 = vmatmul.f32.vlgmr.msrb.gmra.mxu2 %v315_v62 }
 0x1a4   :  { %v390_v2 = vpop.f32.mrf.mxu3 }
 0x1aa   :  { %v370_v0 = vpop.f32.mrf.mxu2 }
 0x1ab   :  { %v371_v1 = vadd.f32 %v412_v63, %v370_v0 }
 0x1ad   :  { %v391_v3 = vadd.f32 %v390_v2, %v371_v1 }
 0x1af   :  { %393 = vst [vmem:[%s619_s7] sm:$0xff] %v391_v3 }
 0x1b0   :  { %398 = vsyncpa [#allocation3], 1 }
 0x1b1   :  { %399 = vsyncpa [#allocation5], 1 }
 0x1b2   :  { %400 = vsyncpa [#allocation8], 1 }

</bundles_post_ra>
